<compile_context>
chip_gen: v5e
topology: v5e:2x2
jax: 0.10.0
libtpu: 0.0.40
codegen_flags: <defaults>
</compile_context>

<pallas_src>
import math

import jax
import jax.numpy as jnp
from jax.experimental import pallas as pl
from jax.experimental.pallas import tpu as pltpu


def _round_up(x, m):
    return (x + m - 1) // m * m


def siamese_kernel(x_ref, w_enc_ref, b_enc_ref, wh_top_ref, wh_bot_ref,
                   b_head_ref, o_ref):
    bm = o_ref.shape[0]          # per-branch batch tile (x_ref holds 2*bm stacked rows)

    # --- shared-weight encoder: branches pre-stacked along sublanes -> ONE matmul ---
    f = jnp.dot(x_ref[...], w_enc_ref[...], preferred_element_type=jnp.float32)
    f = jnp.maximum(f + b_enc_ref[...], 0.0)            # (2*bm, HID_PAD) f32, lane-dense
    fb = f.astype(jnp.bfloat16)                         # bf16 head operands (v5e-friendly)

    # --- head: split-weight form of cat([f1, f2], axis=1) @ W_head ---
    out = jnp.dot(fb[:bm], wh_top_ref[...], preferred_element_type=jnp.float32)
    out = out + jnp.dot(fb[bm:], wh_bot_ref[...], preferred_element_type=jnp.float32)
    o_ref[...] = (out + b_head_ref[...]).astype(o_ref.dtype)   # (bm, OUT_PAD) bf16


def siamese_forward(x1, x2, w_enc, b_enc, w_head, b_head, *, block_b=None):
    B = x1.shape[0]
    D = math.prod(x1.shape[1:])
    HID = w_enc.shape[1]
    OUT = w_head.shape[1]

    # Batch tile: mem-bound -> big tiles (up to 512 rows/branch), but keep >= 2 grid
    # steps when B allows it so the 'parallel' axis actually feeds both v7x TCs.
    if block_b is None:
        half = -(-B // 2)                                # ceil(B / 2)
        block_b = min(512, max(16, _round_up(half, 16)))
    bm = _round_up(block_b, 16)                          # bf16 sublane alignment
    pb = _round_up(B, bm)
    nb = pb // bm

    hid_pad = _round_up(HID, 128)                        # lane-dense encoder features
    out_pad = _round_up(OUT, 128)                        # unmasked full-vreg output stores

    # Pre-stack both branches per batch tile: (nb, [x1 tile ; x2 tile], bm, D) -> (2*pb, D).
    def flat(x):
        xf = x.reshape(B, D).astype(jnp.bfloat16)
        return jnp.pad(xf, ((0, pb - B), (0, 0))).reshape(nb, bm, D)

    xs = jnp.stack([flat(x1), flat(x2)], axis=1).reshape(2 * pb, D)

    w_enc_p = jnp.pad(w_enc.astype(jnp.bfloat16), ((0, 0), (0, hid_pad - HID)))
    b_enc_p = jnp.pad(b_enc.astype(jnp.float32), (0, hid_pad - HID)).reshape(1, hid_pad)

    wh = w_head.astype(jnp.bfloat16)
    wh_top = jnp.pad(wh[:HID], ((0, hid_pad - HID), (0, out_pad - OUT)))
    wh_bot = jnp.pad(wh[HID:], ((0, hid_pad - HID), (0, out_pad - OUT)))
    b_head_p = jnp.pad(b_head.astype(jnp.float32), (0, out_pad - OUT)).reshape(1, out_pad)

    # Advisory cost estimate (encoder + head FLOPs; HBM bytes in + weights + out).
    flops = 2 * (2 * pb) * D * hid_pad + 2 * 2 * pb * hid_pad * out_pad
    bytes_accessed = (xs.size * 2 + w_enc_p.size * 2 + wh_top.size * 2 + wh_bot.size * 2
                      + b_enc_p.size * 4 + b_head_p.size * 4 + pb * out_pad * 2)

    # Weights/biases: full blocks, same block index every grid step -> stay resident.
    resident = lambda shape: pl.BlockSpec(shape, lambda i, s=len(shape): (0,) * s)

    out = pl.pallas_call(
        siamese_kernel,
        out_shape=jax.ShapeDtypeStruct((pb, out_pad), jnp.bfloat16),
        grid=(nb,),
        in_specs=[
            pl.BlockSpec((2 * bm, D), lambda i: (i, 0)),   # pre-stacked branches
            resident(w_enc_p.shape),
            resident(b_enc_p.shape),
            resident(wh_top.shape),
            resident(wh_bot.shape),
            resident(b_head_p.shape),
        ],
        out_specs=pl.BlockSpec((bm, out_pad), lambda i: (i, 0)),
        compiler_params=pltpu.CompilerParams(
            dimension_semantics=("parallel",)),
        cost_estimate=pl.CostEstimate(
            flops=flops, transcendentals=0, bytes_accessed=bytes_accessed),
    )(xs, w_enc_p, b_enc_p, wh_top, wh_bot, b_head_p)

    return out[:B, :OUT].astype(jnp.float32)


def siamese_reference(x1, x2, w_enc, b_enc, w_head, b_head):
    B = x1.shape[0]
    D = math.prod(x1.shape[1:])
    enc = lambda x: jnp.maximum(x.reshape(B, D) @ w_enc + b_enc[None, :], 0.0)
    ftrs = jnp.concatenate([enc(x1), enc(x2)], axis=1)
    return ftrs @ w_head + b_head[None, :]


if __name__ == "__main__":
    B, C, H, W = 2, 4, 16, 16
    D = C * H * W          # 1024
    HID = 32
    OUT = 8

    key = jax.random.PRNGKey(0)
    k1, k2, k3, k4, k5, k6 = jax.random.split(key, 6)

    x1 = jax.random.normal(k1, (B, C, H, W), dtype=jnp.float32)
    x2 = jax.random.normal(k2, (B, C, H, W), dtype=jnp.float32)

    # Deterministic parameter init (shared encoder weights across branches).
    w_enc = jax.random.normal(k3, (D, HID), dtype=jnp.float32) * (1.0 / jnp.sqrt(D))
    b_enc = jax.random.normal(k4, (HID,), dtype=jnp.float32) * 0.01
    w_head = jax.random.normal(k5, (2 * HID, OUT), dtype=jnp.float32) * (1.0 / jnp.sqrt(2 * HID))
    b_head = jax.random.normal(k6, (OUT,), dtype=jnp.float32) * 0.01

    out = jax.block_until_ready(siamese_forward(x1, x2, w_enc, b_enc, w_head, b_head))
    ref = siamese_reference(x1, x2, w_enc, b_enc, w_head, b_head)

    assert out.shape == (B, OUT)
    # bf16 MXU inputs / bf16 output store with f32 accumulation -> loosened tolerance.
    assert jnp.allclose(out, ref, atol=5e-2, rtol=5e-2), "mismatch vs reference"

    print("KERNEL_OK")
</pallas_src>

<mosaic_0001>
module attributes {stable_mosaic.version = 11 : i64} {
  func.func @siamese_kernel(%arg0: i32, %arg1: memref<32x1024xbf16, #tpu.memory_space<vmem>>, %arg2: memref<1024x128xbf16, #tpu.memory_space<vmem>>, %arg3: memref<1x128xf32, #tpu.memory_space<vmem>>, %arg4: memref<128x128xbf16, #tpu.memory_space<vmem>>, %arg5: memref<128x128xbf16, #tpu.memory_space<vmem>>, %arg6: memref<1x128xf32, #tpu.memory_space<vmem>>, %arg7: memref<16x128xbf16, #tpu.memory_space<vmem>>) attributes {dimension_semantics = [#tpu.dimension_semantics<parallel>], iteration_bounds = array<i64: 1>, scalar_prefetch = 0 : i64, scratch_operands = 0 : i64, tpu.core_type = #tpu.core_type<tc>, window_params = [{transform_indices = @transform_0, window_bounds = array<i64: 32, 1024>}, {pipeline_mode = #tpu.pipeline_mode<synchronous>, transform_indices = @transform_1, window_bounds = array<i64: 1024, 128>}, {pipeline_mode = #tpu.pipeline_mode<synchronous>, transform_indices = @transform_2, window_bounds = array<i64: 1, 128>}, {pipeline_mode = #tpu.pipeline_mode<synchronous>, transform_indices = @transform_3, window_bounds = array<i64: 128, 128>}, {pipeline_mode = #tpu.pipeline_mode<synchronous>, transform_indices = @transform_4, window_bounds = array<i64: 128, 128>}, {pipeline_mode = #tpu.pipeline_mode<synchronous>, transform_indices = @transform_5, window_bounds = array<i64: 1, 128>}, {transform_indices = @transform_6, window_bounds = array<i64: 16, 128>}]} {
    %c0 = arith.constant 0 : index
    %c0_0 = arith.constant 0 : index
    %0 = vector.load %arg1[%c0, %c0_0] : memref<32x1024xbf16, #tpu.memory_space<vmem>>, vector<32x1024xbf16>
    %c0_1 = arith.constant 0 : index
    %c0_2 = arith.constant 0 : index
    %1 = vector.load %arg2[%c0_1, %c0_2] : memref<1024x128xbf16, #tpu.memory_space<vmem>>, vector<1024x128xbf16>
    %cst = arith.constant dense<0.000000e+00> : vector<32x128xf32>
    %2 = tpu.matmul %0, %1, %cst {dimension_numbers = #tpu.dot_dimension_numbers<[1], [0], [0], [1], [0, 0, 1, 1], [], []>} : vector<32x1024xbf16>, vector<1024x128xbf16>, vector<32x128xf32> -> vector<32x128xf32>
    %c0_3 = arith.constant 0 : index
    %c0_4 = arith.constant 0 : index
    %3 = vector.load %arg3[%c0_3, %c0_4] : memref<1x128xf32, #tpu.memory_space<vmem>>, vector<1x128xf32>
    %4 = vector.broadcast %3 : vector<1x128xf32> to vector<32x128xf32>
    %5 = arith.addf %2, %4 : vector<32x128xf32>
    %cst_5 = arith.constant 0.000000e+00 : f32
    %6 = vector.broadcast %cst_5 : f32 to vector<32x128xf32>
    %7 = arith.maximumf %5, %6 : vector<32x128xf32>
    %8 = arith.truncf %7 : vector<32x128xf32> to vector<32x128xbf16>
    %9 = vector.extract_strided_slice %8 {offsets = [0, 0], sizes = [16, 128], strides = [1, 1]} : vector<32x128xbf16> to vector<16x128xbf16>
    %c0_6 = arith.constant 0 : index
    %c0_7 = arith.constant 0 : index
    %10 = vector.load %arg4[%c0_6, %c0_7] : memref<128x128xbf16, #tpu.memory_space<vmem>>, vector<128x128xbf16>
    %cst_8 = arith.constant dense<0.000000e+00> : vector<16x128xf32>
    %11 = tpu.matmul %9, %10, %cst_8 {dimension_numbers = #tpu.dot_dimension_numbers<[1], [0], [0], [1], [0, 0, 1, 1], [], []>} : vector<16x128xbf16>, vector<128x128xbf16>, vector<16x128xf32> -> vector<16x128xf32>
    %12 = vector.extract_strided_slice %8 {offsets = [16, 0], sizes = [16, 128], strides = [1, 1]} : vector<32x128xbf16> to vector<16x128xbf16>
    %c0_9 = arith.constant 0 : index
    %c0_10 = arith.constant 0 : index
    %13 = vector.load %arg5[%c0_9, %c0_10] : memref<128x128xbf16, #tpu.memory_space<vmem>>, vector<128x128xbf16>
    %cst_11 = arith.constant dense<0.000000e+00> : vector<16x128xf32>
    %14 = tpu.matmul %12, %13, %cst_11 {dimension_numbers = #tpu.dot_dimension_numbers<[1], [0], [0], [1], [0, 0, 1, 1], [], []>} : vector<16x128xbf16>, vector<128x128xbf16>, vector<16x128xf32> -> vector<16x128xf32>
    %15 = arith.addf %11, %14 : vector<16x128xf32>
    %c0_12 = arith.constant 0 : index
    %c0_13 = arith.constant 0 : index
    %16 = vector.load %arg6[%c0_12, %c0_13] : memref<1x128xf32, #tpu.memory_space<vmem>>, vector<1x128xf32>
    %17 = vector.broadcast %16 : vector<1x128xf32> to vector<16x128xf32>
    %18 = arith.addf %15, %17 : vector<16x128xf32>
    %19 = arith.truncf %18 : vector<16x128xf32> to vector<16x128xbf16>
    %c0_14 = arith.constant 0 : index
    %c0_15 = arith.constant 0 : index
    %20 = vector.load %arg7[%c0_14, %c0_15] : memref<16x128xbf16, #tpu.memory_space<vmem>>, vector<16x128xbf16>
    tpu.vector_store %arg7[%c0_14, %c0_15], %19 {strides = array<i32>} : memref<16x128xbf16, #tpu.memory_space<vmem>>, vector<16x128xbf16>,
    return
  }
  func.func @transform_0(%arg0: i32) -> (i32, i32) {
    %c0_i32 = arith.constant 0 : i32
    %c0_i32_0 = arith.constant 0 : i32
    return %arg0, %c0_i32 : i32, i32
  }
  func.func @transform_1(%arg0: i32) -> (i32, i32) {
    %c0_i32 = arith.constant 0 : i32
    %c0_i32_0 = arith.constant 0 : i32
    %c0_i32_1 = arith.constant 0 : i32
    return %c0_i32, %c0_i32_0 : i32, i32
  }
  func.func @transform_2(%arg0: i32) -> (i32, i32) {
    %c0_i32 = arith.constant 0 : i32
    %c0_i32_0 = arith.constant 0 : i32
    %c0_i32_1 = arith.constant 0 : i32
    return %c0_i32, %c0_i32_0 : i32, i32
  }
  func.func @transform_3(%arg0: i32) -> (i32, i32) {
    %c0_i32 = arith.constant 0 : i32
    %c0_i32_0 = arith.constant 0 : i32
    %c0_i32_1 = arith.constant 0 : i32
    return %c0_i32, %c0_i32_0 : i32, i32
  }
  func.func @transform_4(%arg0: i32) -> (i32, i32) {
    %c0_i32 = arith.constant 0 : i32
    %c0_i32_0 = arith.constant 0 : i32
    %c0_i32_1 = arith.constant 0 : i32
    return %c0_i32, %c0_i32_0 : i32, i32
  }
  func.func @transform_5(%arg0: i32) -> (i32, i32) {
    %c0_i32 = arith.constant 0 : i32
    %c0_i32_0 = arith.constant 0 : i32
    %c0_i32_1 = arith.constant 0 : i32
    return %c0_i32, %c0_i32_0 : i32, i32
  }
  func.func @transform_6(%arg0: i32) -> (i32, i32) {
    %c0_i32 = arith.constant 0 : i32
    %c0_i32_0 = arith.constant 0 : i32
    return %arg0, %c0_i32 : i32, i32
  }
}

</mosaic_0001>

<bundles_post_ra>
// kernel: tpu_custom_call.1
= control target key start
LH: loop header
LB: loop body
LE: loop exit
PB: predicated region body
PF: predicated region fallthrough
CT: control target
= control target key end

     0   :  { %11 = vsyncpa [#allocation3], 0  ;;  %s1759_s0 = inlined_call_operand.hbm [shape: bf16[32,1024], index: 0, kind: input, shape index: {}]   ;;  %s1760_s1 = inlined_call_operand.hbm [shape: bf16[1024,128], index: 1, kind: input, shape index: {}]   ;;  %s1761_s2 = inlined_call_operand.vmem [shape: f32[1,128], index: 2, kind: input, shape index: {}]   ;;  %s1762_s3 = inlined_call_operand.hbm [shape: bf16[128,128], index: 3, kind: input, shape index: {}]   ;;  %s1763_s4 = inlined_call_operand.hbm [shape: bf16[128,128], index: 4, kind: input, shape index: {}]   ;;  %s1764_s5 = inlined_call_operand.vmem [shape: f32[1,128], index: 5, kind: input, shape index: {}]   ;;  %s1765_s6 = inlined_call_operand.hbm [shape: bf16[16,128], index: 6, kind: output, shape index: {}]  }
   0x1   :  { %12 = vsyncpa [#allocation6], 0 }
   0x2   :  { %13 = vsyncpa [#allocation9], 0  ;;  %s32_s23 = sshll.u32 %s1760_s1, 4  ;;  %s33_s23 = int_to_ptr.hbm [resolvable:$true] %s32_s23 }
   0x3   :  { %14 = vsyncpa [#allocation4], 0  ;;  %s1682_s24 = smov [#allocation5]   ;;  %s19_s28 = sshll.u32 %s1759_s0, 4  ;;  %s20_s28 = int_to_ptr.hbm [resolvable:$true] %s19_s28 }
   0x4   :  { %s34_s25 = sshll.u32 %s1682_s24, 4  ;;  %s1683_s29 = smov 64   ;;  %s35_s25 = int_to_ptr.vmem [resolvable:$true] %s34_s25 }
   0x5   :  { %s1684_s30 = smov 4   ;;  %s1685_s7 = smov [#allocation2]  }
   0x6   :  { %40 = dma.hbm_to_vmem [thread:$0]  %s33_s23, 8192, %s35_s25, [#allocation6], %s1683_s29, %s1683_s29, %s1684_s30  }
   0x7   :  { %s21_s8 = sshll.u32 %s1685_s7, 4  ;;  %s1686_s1 = smov 512   ;;  %s22_s8 = int_to_ptr.vmem [resolvable:$true] %s21_s8 }
   0x8   :  { %s1687_s9 = smov 32   ;;  %s47_s12 = sshll.u32 %s1762_s3, 4  ;;  %s48_s12 = int_to_ptr.hbm [resolvable:$true] %s47_s12 }
   0x9   :  { %27 = dma.hbm_to_vmem [thread:$0]  %s20_s28, 2048, %s22_s8, [#allocation3], %s1686_s1, %s1686_s1, %s1687_s9  }
   0xa   :  { %s1688_s13 = smov [#allocation7]   ;;  %s60_s16 = sshll.u32 %s1763_s4, 4  ;;  %s61_s16 = int_to_ptr.hbm [resolvable:$true] %s60_s16 }
   0xb   :  { %s49_s0 = sshll.u32 %s1688_s13, 4  ;;  %s1689_s17 = smov [#allocation8]   ;;  %s50_s0 = int_to_ptr.vmem [resolvable:$true] %s49_s0 }
   0xc   :  { %55 = dma.hbm_to_vmem [thread:$0]  %s48_s12, 1024, %s50_s0, [#allocation6], %s1683_s29, %s1683_s29, %s1684_s30  }
   0xd   :  { %s62_s18 = sshll.u32 %s1689_s17, 4  ;;  %s63_s18 = int_to_ptr.vmem [resolvable:$true] %s62_s18 }
   0xe   :  { %68 = dma.hbm_to_vmem [thread:$0]  %s61_s16, 1024, %s63_s18, [#allocation9], %s1683_s29, %s1683_s29, %s1684_s30  }
   0xf   :  { %1674 = dma.done.wait [#allocation3], 2048  }
  0x10   :  { %1675 = vsyncadd [#allocation3], 4294965248 }
  0x11   :  { %1676 = dma.done.wait [#allocation6], 9216  }
  0x12   :  { %1677 = vsyncadd [#allocation6], 4294958080 }
  0x13   :  { %1678 = dma.done.wait [#allocation9], 1024  }
  0x14   :  { %1679 = vsyncadd [#allocation9], 4294966272  ;;  %v1465_v0 = vld [vmem:[#allocation5 + $0x38] sm:$0xff]  ;;  %v1464_v4 = vld [vmem:[#allocation5 + $0x30] sm:$0xff]  ;;  %s1690_s20 = smov [#allocation10]   ;;  %s1043_s24 = sshll.u32 %s1765_s6, 4  ;;  %s1044_s24 = int_to_ptr.hbm [resolvable:$true] %s1043_s24 }
  0x15   :  { %v1473_v1 = vld [vmem:[#allocation5 + $0x78] sm:$0xff]  ;;  %699 = vmatpush.bf16.msra.mxu0 %v1465_v0  ;;  %v1472_v5 = vld [vmem:[#allocation5 + $0x70] sm:$0xff]  ;;  %v1463_v8 = vld [vmem:[#allocation5 + $0x28] sm:$0xff]  ;;  %s1041_s21 = sshll.u32 %s1690_s20, 4  ;;  %s1042_s21 = int_to_ptr.vmem [resolvable:$true] %s1041_s21 }
  0x16   :  { %v1481_v2 = vld [vmem:[#allocation5 + $0xb8] sm:$0xff]  ;;  %718 = vmatpush.bf16.msra.mxu1 %v1473_v1  ;;  %v1480_v6 = vld [vmem:[#allocation5 + $0xb0] sm:$0xff]  ;;  %v1471_v9 = vld [vmem:[#allocation5 + $0x68] sm:$0xff] }
  0x17   :  { %v1489_v3 = vld [vmem:[#allocation5 + $0xf8] sm:$0xff]  ;;  %737 = vmatpush.bf16.msra.mxu2 %v1481_v2  ;;  %v1488_v7 = vld [vmem:[#allocation5 + $0xf0] sm:$0xff]  ;;  %v1479_v10 = vld [vmem:[#allocation5 + $0xa8] sm:$0xff] }
  0x18   :  { %756 = vmatpush.bf16.msra.mxu3 %v1489_v3  ;;  %v1487_v11 = vld [vmem:[#allocation5 + $0xe8] sm:$0xff]  ;;  %v1462_v12 = vld [vmem:[#allocation5 + $0x20] sm:$0xff]  ;;  %v1461_v16 = vld [vmem:[#allocation5 + $0x18] sm:$0xff] }
  0x19   :  { %700 = vmatpush.bf16.msra.mxu0 %v1464_v4  ;;  %v1470_v13 = vld [vmem:[#allocation5 + $0x60] sm:$0xff]  ;;  %v1469_v17 = vld [vmem:[#allocation5 + $0x58] sm:$0xff]  ;;  %v1460_v20 = vld [vmem:[#allocation5 + $0x10] sm:$0xff] }
  0x1a   :  { %719 = vmatpush.bf16.msra.mxu1 %v1472_v5  ;;  %v1478_v14 = vld [vmem:[#allocation5 + $0xa0] sm:$0xff]  ;;  %v1477_v18 = vld [vmem:[#allocation5 + $0x98] sm:$0xff]  ;;  %v1468_v21 = vld [vmem:[#allocation5 + $0x50] sm:$0xff] }
  0x1b   :  { %738 = vmatpush.bf16.msra.mxu2 %v1480_v6  ;;  %v1486_v15 = vld [vmem:[#allocation5 + $0xe0] sm:$0xff]  ;;  %v1485_v19 = vld [vmem:[#allocation5 + $0xd8] sm:$0xff]  ;;  %v1476_v22 = vld [vmem:[#allocation5 + $0x90] sm:$0xff] }
  0x1c   :  { %757 = vmatpush.bf16.msra.mxu3 %v1488_v7  ;;  %v1484_v23 = vld [vmem:[#allocation5 + $0xd0] sm:$0xff]  ;;  %v1459_v24 = vld [vmem:[#allocation5 + $0x8] sm:$0xff]  ;;  %v1458_v28 = vld [vmem:[#allocation5] sm:$0xff] }
  0x1d   :  { %701 = vmatpush.bf16.msra.mxu0 %v1463_v8  ;;  %v1467_v25 = vld [vmem:[#allocation5 + $0x48] sm:$0xff]  ;;  %v1466_v29 = vld [vmem:[#allocation5 + $0x40] sm:$0xff]  ;;  %v1513_v40 = vld [vmem:[#allocation5 + $0x1b8] sm:$0xff] }
  0x1e   :  { %720 = vmatpush.bf16.msra.mxu1 %v1471_v9  ;;  %v1475_v26 = vld [vmem:[#allocation5 + $0x88] sm:$0xff]  ;;  %v1060_v30 = vld [vmem:[#allocation2] sm:$0xf]  ;;  %v1442_v34 = vld [vmem:[#allocation2 + $0x4] sm:$0xf] }
  0x1f   :  { %739 = vmatpush.bf16.msra.mxu2 %v1479_v10  ;;  %v1483_v27 = vld [vmem:[#allocation5 + $0xc8] sm:$0xff]  ;;  %v1474_v31 = vld [vmem:[#allocation5 + $0x80] sm:$0xff]  ;;  %v1497_v41 = vld [vmem:[#allocation5 + $0x138] sm:$0xff] }
  0x20   :  { %758 = vmatpush.bf16.msra.mxu3 %v1487_v11  ;;  %v1482_v32 = vld [vmem:[#allocation5 + $0xc0] sm:$0xff]  ;;  %v1068_v36 = vld [vmem:[#allocation2 + $0x8] sm:$0xf]  ;;  %v1443_v38 = vld [vmem:[#allocation2 + $0xc] sm:$0xf] }
  0x21   :  { %702 = vmatpush.bf16.msra.mxu0 %v1462_v12  ;;  %v1446_v33 = vld [vmem:[#allocation2 + $0x1c] sm:$0xf0]  ;;  %v1062_v35 = vld [vmem:[#allocation2 + $0x20] sm:$0xf0]  ;;  %v1447_v37 = vld [vmem:[#allocation2 + $0x24] sm:$0xf0] }
  0x22   :  { %721 = vmatpush.bf16.msra.mxu1 %v1470_v13  ;;  %v1070_v39 = vld [vmem:[#allocation2 + $0x28] sm:$0xf0]  ;;  %v1061_v42 = vor.u32 %v1446_v33, %v1060_v30  ;;  %v1065_v43 = vor.u32 %v1442_v34, %v1062_v35  ;;  %v1069_v44 = vor.u32 %v1447_v37, %v1068_v36  ;;  %v1505_v46 = vld [vmem:[#allocation5 + $0x178] sm:$0xff]  ;;  %v1512_v48 = vld [vmem:[#allocation5 + $0x1b0] sm:$0xff] }
  0x23   :  { %740 = vmatpush.bf16.msra.mxu2 %v1478_v14  ;;  %v1073_v45 = vor.u32 %v1443_v38, %v1070_v39  ;;  %v1521_v47 = vld [vmem:[#allocation5 + $0x1f8] sm:$0xff]  ;;  %v1496_v49 = vld [vmem:[#allocation5 + $0x130] sm:$0xff]  ;;  %v1511_v52 = vld [vmem:[#allocation5 + $0x1a8] sm:$0xff] }
  0x24   :  { %759 = vmatpush.bf16.msra.mxu3 %v1486_v15  ;;  %v1504_v50 = vld [vmem:[#allocation5 + $0x170] sm:$0xff]  ;;  %v1495_v53 = vld [vmem:[#allocation5 + $0x128] sm:$0xff]  ;;  %v1510_v56 = vld [vmem:[#allocation5 + $0x1a0] sm:$0xff] }
  0x25   :  { %703 = vmatpush.bf16.msra.mxu0 %v1461_v16  ;;  %v1520_v51 = vld [vmem:[#allocation5 + $0x1f0] sm:$0xff]  ;;  %v1503_v54 = vld [vmem:[#allocation5 + $0x168] sm:$0xff]  ;;  %v1494_v57 = vld [vmem:[#allocation5 + $0x120] sm:$0xff] }
  0x26   :  { %722 = vmatpush.bf16.msra.mxu1 %v1469_v17  ;;  %v1519_v55 = vld [vmem:[#allocation5 + $0x1e8] sm:$0xff]  ;;  %v1502_v58 = vld [vmem:[#allocation5 + $0x160] sm:$0xff]  ;;  %v1509_v4 = vld [vmem:[#allocation5 + $0x198] sm:$0xff] }
  0x27   :  { %741 = vmatpush.bf16.msra.mxu2 %v1477_v18  ;;  %v1518_v59 = vld [vmem:[#allocation5 + $0x1e0] sm:$0xff]  ;;  %v1100_v0 = vld [vmem:[#allocation2 + $0x48] sm:$0xf]  ;;  %v1451_v2 = vld [vmem:[#allocation2 + $0x4c] sm:$0xf] }
  0x28   :  { %760 = vmatpush.bf16.msra.mxu3 %v1485_v19  ;;  %v1092_v60 = vld [vmem:[#allocation2 + $0x40] sm:$0xf]  ;;  %v1450_v62 = vld [vmem:[#allocation2 + $0x44] sm:$0xf]  ;;  %v1455_v1 = vld [vmem:[#allocation2 + $0x64] sm:$0xf0] }
  0x29   :  { %704 = vmatpush.bf16.msra.mxu0 %v1460_v20  ;;  %v1454_v61 = vld [vmem:[#allocation2 + $0x5c] sm:$0xf0]  ;;  %v1094_v63 = vld [vmem:[#allocation2 + $0x60] sm:$0xf0]  ;;  %v1102_v3 = vld [vmem:[#allocation2 + $0x68] sm:$0xf0]  ;;  %v1101_v8 = vor.u32 %v1455_v1, %v1100_v0 }
  0x2a   :  { %723 = vmatpush.bf16.msra.mxu1 %v1468_v21  ;;  %v1493_v5 = vld [vmem:[#allocation5 + $0x118] sm:$0xff]  ;;  %v1093_v6 = vor.u32 %v1454_v61, %v1092_v60  ;;  %v1097_v7 = vor.u32 %v1450_v62, %v1094_v63  ;;  %v1105_v9 = vor.u32 %v1451_v2, %v1102_v3  ;;  %v1508_v12 = vld [vmem:[#allocation5 + $0x190] sm:$0xff]  ;;  %v1507_v16 = vld [vmem:[#allocation5 + $0x188] sm:$0xff] }
  0x2b   :  { %742 = vmatpush.bf16.msra.mxu2 %v1476_v22  ;;  %v1501_v10 = vld [vmem:[#allocation5 + $0x158] sm:$0xff]  ;;  %v1492_v13 = vld [vmem:[#allocation5 + $0x110] sm:$0xff]  ;;  %v1491_v17 = vld [vmem:[#allocation5 + $0x108] sm:$0xff] }
  0x2c   :  { %761 = vmatpush.bf16.msra.mxu3 %v1484_v23  ;;  %v1517_v11 = vld [vmem:[#allocation5 + $0x1d8] sm:$0xff]  ;;  %v1500_v14 = vld [vmem:[#allocation5 + $0x150] sm:$0xff]  ;;  %v1499_v18 = vld [vmem:[#allocation5 + $0x148] sm:$0xff] }
  0x2d   :  { %705 = vmatpush.bf16.msra.mxu0 %v1459_v24  ;;  %v1516_v15 = vld [vmem:[#allocation5 + $0x1d0] sm:$0xff]  ;;  %v1515_v19 = vld [vmem:[#allocation5 + $0x1c8] sm:$0xff]  ;;  %v1506_v20 = vld [vmem:[#allocation5 + $0x180] sm:$0xff] }
  0x2e   :  { %724 = vmatpush.bf16.msra.mxu1 %v1467_v25  ;;  %v1490_v21 = vld [vmem:[#allocation5 + $0x100] sm:$0xff]  ;;  %v1076_v24 = vld [vmem:[#allocation2 + $0x10] sm:$0xf]  ;;  %v1445_v30 = vld [vmem:[#allocation2 + $0x1c] sm:$0xf] }
  0x2f   :  { %743 = vmatpush.bf16.msra.mxu2 %v1475_v26  ;;  %v1498_v22 = vld [vmem:[#allocation5 + $0x140] sm:$0xff]  ;;  %v1448_v25 = vld [vmem:[#allocation2 + $0x2c] sm:$0xf0]  ;;  %v1444_v26 = vld [vmem:[#allocation2 + $0x14] sm:$0xf] }
  0x30   :  { %762 = vmatpush.bf16.msra.mxu3 %v1483_v27  ;;  %v1514_v23 = vld [vmem:[#allocation5 + $0x1c0] sm:$0xff]  ;;  %v1078_v27 = vld [vmem:[#allocation2 + $0x30] sm:$0xf0]  ;;  %v1108_v36 = vld [vmem:[#allocation2 + $0x50] sm:$0xf] }
  0x31   :  { %706 = vmatpush.bf16.msra.mxu0 %v1458_v28  ;;  %v1084_v28 = vld [vmem:[#allocation2 + $0x18] sm:$0xf]  ;;  %v1081_v33 = vor.u32 %v1444_v26, %v1078_v27  ;;  %v1456_v37 = vld [vmem:[#allocation2 + $0x6c] sm:$0xf0]  ;;  %v1452_v38 = vld [vmem:[#allocation2 + $0x54] sm:$0xf] }
  0x32   :  { %725 = vmatpush.bf16.msra.mxu1 %v1466_v29  ;;  %v1449_v29 = vld [vmem:[#allocation2 + $0x34] sm:$0xf0]  ;;  %v1110_v39 = vld [vmem:[#allocation2 + $0x70] sm:$0xf0]  ;;  %v1552_v62 = vld [vmem:[%s1761_s2] ss:$0 sm:$0xff] }
  0x33   :  { %744 = vmatpush.bf16.msra.mxu2 %v1474_v31  ;;  %v1086_v31 = vld [vmem:[#allocation2 + $0x38] sm:$0xf0]  ;;  %v1085_v34 = vor.u32 %v1449_v29, %v1084_v28  ;;  %v1536_v1 = vld [vmem:[#allocation8 + $0x30] sm:$0xff]  ;;  %v1531_v26 = vld [vmem:[#allocation8 + $0x8] sm:$0xff] }
  0x34   :  { %763 = vmatpush.bf16.msra.mxu3 %v1482_v32  ;;  %707 = vmatmul.bf16.vlgmr.msra.gmra.mxu0 %v1061_v42  ;;  %v1077_v32 = vor.u32 %v1448_v25, %v1076_v24  ;;  %v1089_v35 = vor.u32 %v1445_v30, %v1086_v31  ;;  %v1453_v42 = vld [vmem:[#allocation2 + $0x5c] sm:$0xf]  ;;  %v1524_v2 = vld [vmem:[#allocation7 + $0x10] sm:$0xff] }
  0x35   :  { %775 = vmatpush.bf16.msrb.mxu0 %v1497_v41  ;;  %726 = vmatmul.bf16.vlgmr.msra.gmra.mxu1 %v1065_v43  ;;  %v1457_v41 = vld [vmem:[#allocation2 + $0x74] sm:$0xf0]  ;;  %v1118_v43 = vld [vmem:[#allocation2 + $0x78] sm:$0xf0] }
  0x36   :  { %745 = vmatmul.bf16.vlgmr.msra.gmra.mxu2 %v1069_v44  ;;  %794 = vmatpush.bf16.msrb.mxu1 %v1505_v46  ;;  %v1109_v44 = vor.u32 %v1456_v37, %v1108_v36 }
  0x37   :  { %813 = vmatpush.bf16.msrb.mxu2 %v1513_v40  ;;  %764 = vmatmul.bf16.vlgmr.msra.gmra.mxu3 %v1073_v45  ;;  %v1116_v40 = vld [vmem:[#allocation2 + $0x58] sm:$0xf]  ;;  %v1113_v45 = vor.u32 %v1452_v38, %v1110_v39 }
  0x38   :  { %832 = vmatpush.bf16.msrb.mxu3 %v1521_v47  ;;  %v1117_v46 = vor.u32 %v1457_v41, %v1116_v40  ;;  %v1121_v47 = vor.u32 %v1453_v42, %v1118_v43 }
  0x39   :  { %776 = vmatpush.bf16.msrb.mxu0 %v1496_v49 }
  0x3a   :  { %795 = vmatpush.bf16.msrb.mxu1 %v1504_v50 }
  0x3b   :  { %814 = vmatpush.bf16.msrb.mxu2 %v1512_v48  ;;  %v1529_v48 = vld [vmem:[#allocation7 + $0x38] sm:$0xff] }
  0x3c   :  { %833 = vmatpush.bf16.msrb.mxu3 %v1520_v51  ;;  %v1528_v51 = vld [vmem:[#allocation7 + $0x30] sm:$0xff] }
  0x3d   :  { %777 = vmatpush.bf16.msrb.mxu0 %v1495_v53 }
  0x3e   :  { %796 = vmatpush.bf16.msrb.mxu1 %v1503_v54 }
  0x3f   :  { %815 = vmatpush.bf16.msrb.mxu2 %v1511_v52  ;;  %v1527_v52 = vld [vmem:[#allocation7 + $0x28] sm:$0xff] }
  0x40   :  { %834 = vmatpush.bf16.msrb.mxu3 %v1519_v55 }
  0x41   :  { %778 = vmatpush.bf16.msrb.mxu0 %v1494_v57  ;;  %v1526_v57 = vld [vmem:[#allocation7 + $0x20] sm:$0xff] }
  0x42   :  { %797 = vmatpush.bf16.msrb.mxu1 %v1502_v58  ;;  %v1537_v58 = vld [vmem:[#allocation8 + $0x38] sm:$0xff] }
  0x43   :  { %816 = vmatpush.bf16.msrb.mxu2 %v1510_v56 }
  0x44   :  { %835 = vmatpush.bf16.msrb.mxu3 %v1518_v59  ;;  %712 = vmatmul.bf16.gmra.mxu0 %v1093_v6  ;;  %v1525_v59 = vld [vmem:[#allocation7 + $0x18] sm:$0xff] }
  0x45   :  { %779 = vmatpush.bf16.msrb.mxu0 %v1493_v5  ;;  %731 = vmatmul.bf16.gmra.mxu1 %v1097_v7  ;;  %v1523_v5 = vld [vmem:[#allocation7 + $0x8] sm:$0xff] }
  0x46   :  { %750 = vmatmul.bf16.gmra.mxu2 %v1101_v8  ;;  %798 = vmatpush.bf16.msrb.mxu1 %v1501_v10 }
  0x47   :  { %817 = vmatpush.bf16.msrb.mxu2 %v1509_v4  ;;  %769 = vmatmul.bf16.gmra.mxu3 %v1105_v9  ;;  %v1535_v4 = vld [vmem:[#allocation8 + $0x28] sm:$0xff] }
  0x48   :  { %836 = vmatpush.bf16.msrb.mxu3 %v1517_v11  ;;  %v1534_v11 = vld [vmem:[#allocation8 + $0x20] sm:$0xff] }
  0x49   :  { %780 = vmatpush.bf16.msrb.mxu0 %v1492_v13 }
  0x4a   :  { %799 = vmatpush.bf16.msrb.mxu1 %v1500_v14  ;;  %v1533_v14 = vld [vmem:[#allocation8 + $0x18] sm:$0xff] }
  0x4b   :  { %818 = vmatpush.bf16.msrb.mxu2 %v1508_v12  ;;  %v1522_v12 = vld [vmem:[#allocation7] sm:$0xff] }
  0x4c   :  { %837 = vmatpush.bf16.msrb.mxu3 %v1516_v15 }
  0x4d   :  { %781 = vmatpush.bf16.msrb.mxu0 %v1491_v17 }
  0x4e   :  { %800 = vmatpush.bf16.msrb.mxu1 %v1499_v18 }
  0x4f   :  { %819 = vmatpush.bf16.msrb.mxu2 %v1507_v16 }
  0x50   :  { %838 = vmatpush.bf16.msrb.mxu3 %v1515_v19 }
  0x51   :  { %782 = vmatpush.bf16.msrb.mxu0 %v1490_v21 }
  0x52   :  { %801 = vmatpush.bf16.msrb.mxu1 %v1498_v22 }
  0x53   :  { %820 = vmatpush.bf16.msrb.mxu2 %v1506_v20  ;;  %v1532_v20 = vld [vmem:[#allocation8 + $0x10] sm:$0xff] }
  0x54   :  { %839 = vmatpush.bf16.msrb.mxu3 %v1514_v23  ;;  %783 = vmatmul.bf16.vlgmr.msrb.gmra.mxu0 %v1077_v32 }
  0x55   :  { %802 = vmatmul.bf16.vlgmr.msrb.gmra.mxu1 %v1081_v33  ;;  %945 = vmatpush.bf16.msra.mxu0 %v1537_v58 }
  0x56   :  { %821 = vmatmul.bf16.vlgmr.msrb.gmra.mxu2 %v1085_v34  ;;  %1013 = vmatpush.bf16.msra.mxu1 %v1529_v48  ;;  %v1530_v34 = vld [vmem:[#allocation8] sm:$0xff] }
  0x57   :  { %840 = vmatmul.bf16.vlgmr.msrb.gmra.mxu3 %v1089_v35 }
  0x59   :  { %946 = vmatpush.bf16.msra.mxu0 %v1536_v1 }
  0x5a   :  { %1014 = vmatpush.bf16.msra.mxu1 %v1528_v51 }
  0x5d   :  { %947 = vmatpush.bf16.msra.mxu0 %v1535_v4 }
  0x5e   :  { %1015 = vmatpush.bf16.msra.mxu1 %v1527_v52 }
  0x61   :  { %948 = vmatpush.bf16.msra.mxu0 %v1534_v11 }
  0x62   :  { %1016 = vmatpush.bf16.msra.mxu1 %v1526_v57 }
  0x64   :  { %788 = vmatmul.bf16.gmra.mxu0 %v1109_v44 }
  0x65   :  { %807 = vmatmul.bf16.gmra.mxu1 %v1113_v45  ;;  %949 = vmatpush.bf16.msra.mxu0 %v1533_v14 }
  0x66   :  { %826 = vmatmul.bf16.gmra.mxu2 %v1117_v46  ;;  %1017 = vmatpush.bf16.msra.mxu1 %v1525_v59 }
  0x67   :  { %845 = vmatmul.bf16.gmra.mxu3 %v1121_v47 }
  0x69   :  { %950 = vmatpush.bf16.msra.mxu0 %v1532_v20 }
  0x6a   :  { %1018 = vmatpush.bf16.msra.mxu1 %v1524_v2 }
  0x6d   :  { %951 = vmatpush.bf16.msra.mxu0 %v1531_v26 }
  0x6e   :  { %1019 = vmatpush.bf16.msra.mxu1 %v1523_v5 }
  0x71   :  { %952 = vmatpush.bf16.msra.mxu0 %v1530_v34 }
  0x72   :  { %1020 = vmatpush.bf16.msra.mxu1 %v1522_v12 }
  0xb1   :  { %v708_v49 = vpop.f32.mrf.mxu0 }
  0xb2   :  { %v727_v50 = vpop.f32.mrf.mxu1  ;;  %v709_v3 = vadd.f32 %v1552_v62, %v708_v49 }
  0xb4   :  { %v728_v8 = vadd.f32 %v727_v50, %v709_v3 }
  0xb9   :  { %v746_v53 = vpop.f32.mrf.mxu2  ;;  %v710_v55 = vpop.f32.mrf.mxu0 }
  0xba   :  { %v765_v54 = vpop.f32.mrf.mxu3  ;;  %v729_v56 = vpop.f32.mrf.mxu1  ;;  %v747_v13 = vadd.f32 %v746_v53, %v728_v8  ;;  %v711_v15 = vadd.f32 %v1552_v62, %v710_v55 }
  0xbc   :  { %v766_v18 = vadd.f32 %v765_v54, %v747_v13  ;;  %v730_v22 = vadd.f32 %v729_v56, %v711_v15 }
  0xc1   :  { %v748_v60 = vpop.f32.mrf.mxu2  ;;  %v713_v63 = vpop.f32.mrf.mxu0 }
  0xc2   :  { %v767_v61 = vpop.f32.mrf.mxu3  ;;  %v732_v0 = vpop.f32.mrf.mxu1  ;;  %v749_v24 = vadd.f32 %v748_v60, %v730_v22  ;;  %v714_v25 = vadd.f32 %v1552_v62, %v713_v63 }
  0xc4   :  { %v768_v29 = vadd.f32 %v767_v61, %v749_v24  ;;  %v733_v30 = vadd.f32 %v732_v0, %v714_v25 }
  0xc9   :  { %v751_v6 = vpop.f32.mrf.mxu2  ;;  %v715_v9 = vpop.f32.mrf.mxu0 }
  0xca   :  { %v770_v7 = vpop.f32.mrf.mxu3  ;;  %v734_v10 = vpop.f32.mrf.mxu1  ;;  %v752_v37 = vadd.f32 %v751_v6, %v733_v30  ;;  %v716_v39 = vadd.f32 %v1552_v62, %v715_v9 }
  0xcc   :  { %v771_v42 = vadd.f32 %v770_v7, %v752_v37  ;;  %v735_v47 = vadd.f32 %v734_v10, %v716_v39 }
  0xd1   :  { %v753_v16 = vpop.f32.mrf.mxu2  ;;  %v784_v19 = vpop.f32.mrf.mxu0 }
  0xd2   :  { %v772_v17 = vpop.f32.mrf.mxu3  ;;  %v803_v21 = vpop.f32.mrf.mxu1  ;;  %v785_v23 = vadd.f32 %v784_v19, %v766_v18  ;;  %v754_v51 = vadd.f32 %v753_v16, %v735_v47  ;;  %v1553_v18 = vld [vmem:[%s1764_s5] ss:$0 sm:$0xff] }
  0xd4   :  { %v804_v27 = vadd.f32 %v803_v21, %v785_v23  ;;  %v773_v57 = vadd.f32 %v772_v17, %v754_v51 }
  0xd9   :  { %v822_v28 = vpop.f32.mrf.mxu2  ;;  %v786_v33 = vpop.f32.mrf.mxu0 }
  0xda   :  { %v823_v31 = vadd.f32 %v822_v28, %v804_v27  ;;  %v841_v32 = vpop.f32.mrf.mxu3  ;;  %v805_v35 = vpop.f32.mrf.mxu1  ;;  %v787_v36 = vadd.f32 %v786_v33, %v768_v29 }
  0xdc   :  { %v842_v38 = vadd.f32 %v841_v32, %v823_v31  ;;  %v806_v40 = vadd.f32 %v805_v35, %v787_v36 }
  0xde   :  { %v851_v43 = vmax.f32 %v842_v38, 0.0 }
  0xe0   :  { %v855_v52 = vpack.c.bf16 %v851_v43, %v851_v43 }
  0xe1   :  { %v824_v41 = vpop.f32.mrf.mxu2  ;;  %v789_v46 = vpop.f32.mrf.mxu0 }
  0xe2   :  { %v825_v44 = vadd.f32 %v824_v41, %v806_v40  ;;  %v843_v45 = vpop.f32.mrf.mxu3  ;;  %v790_v49 = vadd.f32 %v789_v46, %v771_v42  ;;  %v808_v50 = vpop.f32.mrf.mxu1  ;;  %v961_v58 = vunpack.c.l.b16 %v855_v52 }
  0xe4   :  { %v844_v48 = vadd.f32 %v843_v45, %v825_v44  ;;  %v809_v55 = vadd.f32 %v808_v50, %v790_v49 }
  0xe6   :  { %v852_v53 = vmax.f32 %v844_v48, 0.0 }
  0xe8   :  { %v856_v54 = vpack.c.bf16 %v852_v53, %v852_v53 }
  0xe9   :  { %v827_v56 = vpop.f32.mrf.mxu2  ;;  %v791_v62 = vpop.f32.mrf.mxu0 }
  0xea   :  { %v962_v59 = vunpack.c.l.b16 %v856_v54  ;;  %v828_v60 = vadd.f32 %v827_v56, %v809_v55  ;;  %v846_v61 = vpop.f32.mrf.mxu3  ;;  %v792_v0 = vadd.f32 %v791_v62, %v773_v57  ;;  %v810_v2 = vpop.f32.mrf.mxu1 }
  0xec   :  { %v963_v63 = vpack.c.b16 %v962_v59, %v961_v58  ;;  %v847_v1 = vadd.f32 %v846_v61, %v828_v60  ;;  %v811_v3 = vadd.f32 %v810_v2, %v792_v0 }
  0xee   :  { %1021 = vmatmul.bf16.vlgmr.msra.gmra.mxu1 %v963_v63  ;;  %v853_v5 = vmax.f32 %v847_v1, 0.0 }
  0xf0   :  { %v857_v9 = vpack.c.bf16 %v853_v5, %v853_v5 }
  0xf1   :  { %v829_v4 = vpop.f32.mrf.mxu2 }
  0xf2   :  { %v830_v6 = vadd.f32 %v829_v4, %v811_v3  ;;  %v848_v7 = vpop.f32.mrf.mxu3  ;;  %v893_v12 = vunpack.c.l.b16 %v857_v9 }
  0xf4   :  { %v849_v8 = vadd.f32 %v848_v7, %v830_v6 }
  0xf6   :  { %v854_v10 = vmax.f32 %v849_v8, 0.0 }
  0xf8   :  { %v858_v11 = vpack.c.bf16 %v854_v10, %v854_v10 }
  0xfa   :  { %v894_v13 = vunpack.c.l.b16 %v858_v11 }
  0xfc   :  { %v895_v14 = vpack.c.b16 %v894_v13, %v893_v12 }
  0xfe   :  { %953 = vmatmul.bf16.vlgmr.msra.gmra.mxu0 %v895_v14 }
 0x16b   :  { %v1022_v15 = vpop.f32.mrf.mxu1 }
 0x173   :  { %v1024_v19 = vpop.f32.mrf.mxu1 }
 0x17b   :  { %v954_v16 = vpop.f32.mrf.mxu0 }
 0x17c   :  { %v1023_v17 = vadd.f32 %v1022_v15, %v954_v16 }
 0x17e   :  { %v1031_v22 = vadd.f32 %v1553_v18, %v1023_v17 }
 0x183   :  { %v956_v20 = vpop.f32.mrf.mxu0 }
 0x184   :  { %v1025_v21 = vadd.f32 %v1024_v19, %v956_v20 }
 0x186   :  { %v1032_v23 = vadd.f32 %v1553_v18, %v1025_v21 }
 0x188   :  { %v1541_v24 = vpack.c.bf16 %v1032_v23, %v1031_v22 }
 0x18a   :  { %1542 = vst [vmem:[#allocation10] sm:$0xff] %v1541_v24  }
 0x18b   :  { %1049 = dma.vmem_to_hbm [thread:$0]  %s1042_s21, 128, %s1044_s24, [#allocation4], %s1683_s29, %s1683_s29, %s1684_s30  }
 0x18c   :  { %1680 = dma.done.wait [#allocation4], 128  }
 0x18d   :  { %1681 = vsyncadd [#allocation4], 4294967168 }
 0x18e   :  { %1054 = vsyncpa [#allocation3], 1 }
 0x18f   :  { %1055 = vsyncpa [#allocation6], 1 }
 0x190   :  { %1056 = vsyncpa [#allocation9], 1 }
 0x191   :  { %1057 = vsyncpa [#allocation4], 1 }

</bundles_post_ra>
